<compile_context>
chip_gen: v5e
topology: v5e:2x2
jax: 0.10.0
libtpu: 0.0.40
codegen_flags: <defaults>
</compile_context>

<pallas_src>
import functools

import jax
import jax.numpy as jnp
import numpy as np
from jax import lax
from jax.experimental import pallas as pl
from jax.experimental.pallas import tpu as pltpu

N, D_IN, D_OUT = 8, 32, 32

ADAM_B1, ADAM_B2, ADAM_EPS = 0.9, 0.999, 1e-8  # torch.optim.Adam defaults


def _vmem():
    return pl.BlockSpec(memory_space=pltpu.MemorySpace.VMEM)


def _smem():
    return pl.BlockSpec(memory_space=pltpu.MemorySpace.SMEM)


# ----------------------------------------------------------------------------
# Fused eval-path kernel: num_steps Adam iterations + final forward, one call.
# ----------------------------------------------------------------------------
def fused_ttt_kernel(x_ref, w_ref, b_ref, out_ref, loss_ref, *, num_steps, lr):
    x = x_ref[...]
    W = w_ref[...]
    b = b_ref[...]

    mW = jnp.zeros_like(W)
    vW = jnp.zeros_like(W)
    mb = jnp.zeros_like(b)
    vb = jnp.zeros_like(b)

    inv_n = 1.0 / float(N * D_OUT)
    loss = jnp.float32(0.0)

    # Unrolled: single trace, single compiled kernel for a given (num_steps, lr).
    for t in range(1, num_steps + 1):
        # model forward + TTT loss (MXU + VPU; loss reduction on XLU)
        y = jnp.dot(x, W, preferred_element_type=jnp.float32) + b
        loss = jnp.sum(y * y) * inv_n          # only last step's value is live
        # dL/dy = 2*y / (N*D_out)
        gy = (2.0 * inv_n) * y
        # dL/dW = x^T @ dL/dy (contract over batch, no explicit transpose)
        gW = lax.dot_general(
            x, gy, (((0,), (0,)), ((), ())), preferred_element_type=jnp.float32
        )
        # dL/db = sum_batch dL/dy
        gb = jnp.sum(gy, axis=0, keepdims=True)

        bc1 = 1.0 - ADAM_B1 ** t
        bc2 = 1.0 - ADAM_B2 ** t

        # Adam on W
        mW = ADAM_B1 * mW + (1.0 - ADAM_B1) * gW
        vW = ADAM_B2 * vW + (1.0 - ADAM_B2) * (gW * gW)
        W = W - lr * (mW / bc1) / (jnp.sqrt(vW / bc2) + ADAM_EPS)
        # Adam on b (folded into the same kernel — one vreg of VPU work)
        mb = ADAM_B1 * mb + (1.0 - ADAM_B1) * gb
        vb = ADAM_B2 * vb + (1.0 - ADAM_B2) * (gb * gb)
        b = b - lr * (mb / bc1) / (jnp.sqrt(vb / bc2) + ADAM_EPS)

    # with torch.no_grad(): final_outputs = running_engine.model(inputs)
    out_ref[...] = jnp.dot(x, W, preferred_element_type=jnp.float32) + b
    # scalar loss via SMEM — avoids a masked (1,1) vector store
    loss_ref[0] = loss


def fused_ttt_forward(x, W, b, num_steps, lr):
    kern = functools.partial(fused_ttt_kernel, num_steps=int(num_steps), lr=float(lr))
    out, loss = pl.pallas_call(
        kern,
        out_shape=(
            jax.ShapeDtypeStruct((N, D_OUT), jnp.float32),
            jax.ShapeDtypeStruct((1,), jnp.float32),
        ),
        in_specs=[_vmem(), _vmem(), _vmem()],
        out_specs=(_vmem(), _smem()),
    )(x, W, b)
    return out, loss[0]


# ----------------------------------------------------------------------------
# Training-path kernel (ttt_forward): forward + loss only.
# ----------------------------------------------------------------------------
def fwd_loss_kernel(x_ref, w_ref, b_ref, y_ref, loss_ref):
    y = (
        jnp.dot(x_ref[...], w_ref[...], preferred_element_type=jnp.float32)
        + b_ref[...]
    )
    y_ref[...] = y
    loss_ref[0] = jnp.sum(y * y) * (1.0 / float(N * D_OUT))


def fwd_loss(x, w, b):
    y, loss = pl.pallas_call(
        fwd_loss_kernel,
        out_shape=(
            jax.ShapeDtypeStruct((N, D_OUT), jnp.float32),
            jax.ShapeDtypeStruct((1,), jnp.float32),
        ),
        in_specs=[_vmem(), _vmem(), _vmem()],
        out_specs=(_vmem(), _smem()),
    )(x, w, b)
    return y, loss[0]


# ----------------------------------------------------------------------------
# Engine reproducing BaseEngine.forward semantics
# ----------------------------------------------------------------------------
class LinearTTTEngine:
    def __init__(self):
        self.optimization_parameters = {}
        self.optimizer = None
        self.training = False
        # deterministic parameter init (synthetic, no checkpoint)
        kw, kb = jax.random.split(jax.random.PRNGKey(42))
        self.W = (0.1 * jax.random.normal(kw, (D_IN, D_OUT))).astype(jnp.float32)
        self.b = (0.1 * jax.random.normal(kb, (1, D_OUT))).astype(jnp.float32)

    def ttt_forward(self, x):
        return fwd_loss(x, self.W, self.b)

    def forward(self, x):
        if self.training:
            return self.ttt_forward(x)

        opt = self.optimization_parameters or {}
        num_steps = opt.get("num_steps", 3)
        lr = opt.get("lr", 0.01)
        # copy_model=True -> optimize a copy of the params; self.{W,b} untouched
        # (the fused kernel never writes back to self.W / self.b).
        # TODO(synk): only the 'adam' optimizer branch is implemented (the default).
        return fused_ttt_forward(x, self.W, self.b, num_steps, lr)


# ----------------------------------------------------------------------------
# Pure-JAX reference (same math, no Pallas) for a sanity check
# ----------------------------------------------------------------------------
def reference_forward(x, W, b, num_steps=3, lr=0.01):
    mW, vW = jnp.zeros_like(W), jnp.zeros_like(W)
    mb, vb = jnp.zeros_like(b), jnp.zeros_like(b)
    loss = jnp.float32(0.0)
    n = float(N * D_OUT)
    for t in range(1, num_steps + 1):
        y = x @ W + b
        loss = jnp.mean(y * y)
        gy = 2.0 * y / n
        gW = x.T @ gy
        gb = jnp.sum(gy, axis=0, keepdims=True)
        bc1 = 1.0 - ADAM_B1 ** t
        bc2 = 1.0 - ADAM_B2 ** t
        mW = ADAM_B1 * mW + (1 - ADAM_B1) * gW
        vW = ADAM_B2 * vW + (1 - ADAM_B2) * gW * gW
        W = W - lr * (mW / bc1) / (jnp.sqrt(vW / bc2) + ADAM_EPS)
        mb = ADAM_B1 * mb + (1 - ADAM_B1) * gb
        vb = ADAM_B2 * vb + (1 - ADAM_B2) * gb * gb
        b = b - lr * (mb / bc1) / (jnp.sqrt(vb / bc2) + ADAM_EPS)
    return x @ W + b, loss


if __name__ == "__main__":
    x = jax.random.normal(jax.random.PRNGKey(0), (N, D_IN), dtype=jnp.float32)

    engine = LinearTTTEngine()
    out, loss = engine.forward(x)
    out = jax.block_until_ready(out)
    loss = jax.block_until_ready(loss)

    ref_out, ref_loss = reference_forward(x, engine.W, engine.b)
    np.testing.assert_allclose(
        np.asarray(out), np.asarray(ref_out), rtol=2e-5, atol=2e-5
    )
    np.testing.assert_allclose(float(loss), float(ref_loss), rtol=2e-5, atol=2e-5)

    print("KERNEL_OK")
</pallas_src>

<mosaic_0001>
module attributes {stable_mosaic.version = 11 : i64} {
  func.func @fused_ttt_kernel(%arg0: memref<8x32xf32, #tpu.memory_space<vmem>>, %arg1: memref<32x32xf32, #tpu.memory_space<vmem>>, %arg2: memref<1x32xf32, #tpu.memory_space<vmem>>, %arg3: memref<8x32xf32, #tpu.memory_space<vmem>>, %arg4: memref<1xf32, #tpu.memory_space<smem>>) attributes {dimension_semantics = [], scalar_prefetch = 0 : i64, scratch_operands = 0 : i64, tpu.core_type = #tpu.core_type<tc>} {
    %c0 = arith.constant 0 : index
    %c0_0 = arith.constant 0 : index
    %0 = vector.load %arg0[%c0, %c0_0] : memref<8x32xf32, #tpu.memory_space<vmem>>, vector<8x32xf32>
    %c0_1 = arith.constant 0 : index
    %c0_2 = arith.constant 0 : index
    %1 = vector.load %arg1[%c0_1, %c0_2] : memref<32x32xf32, #tpu.memory_space<vmem>>, vector<32x32xf32>
    %c0_3 = arith.constant 0 : index
    %c0_4 = arith.constant 0 : index
    %2 = vector.load %arg2[%c0_3, %c0_4] : memref<1x32xf32, #tpu.memory_space<vmem>>, vector<1x32xf32>
    %cst = arith.constant 0.000000e+00 : f32
    %3 = vector.broadcast %cst : f32 to vector<32x32xf32>
    %cst_5 = arith.constant 0.000000e+00 : f32
    %4 = vector.broadcast %cst_5 : f32 to vector<32x32xf32>
    %cst_6 = arith.constant 0.000000e+00 : f32
    %5 = vector.broadcast %cst_6 : f32 to vector<1x32xf32>
    %cst_7 = arith.constant 0.000000e+00 : f32
    %6 = vector.broadcast %cst_7 : f32 to vector<1x32xf32>
    %cst_8 = arith.constant dense<0.000000e+00> : vector<8x32xf32>
    %7 = tpu.matmul %0, %1, %cst_8 {dimension_numbers = #tpu.dot_dimension_numbers<[1], [0], [0], [1], [0, 0, 1, 1], [], []>} : vector<8x32xf32>, vector<32x32xf32>, vector<8x32xf32> -> vector<8x32xf32>
    %8 = vector.broadcast %2 : vector<1x32xf32> to vector<8x32xf32>
    %9 = arith.addf %7, %8 : vector<8x32xf32>
    %cst_9 = arith.constant 7.812500e-03 : f32
    %10 = vector.broadcast %cst_9 : f32 to vector<8x32xf32>
    %11 = arith.mulf %10, %9 : vector<8x32xf32>
    %cst_10 = arith.constant dense<0.000000e+00> : vector<32x32xf32>
    %12 = tpu.matmul %0, %11, %cst_10 {dimension_numbers = #tpu.dot_dimension_numbers<[0], [0], [1], [1], [0, 1, 1, 1], [], []>} : vector<8x32xf32>, vector<8x32xf32>, vector<32x32xf32> -> vector<32x32xf32>
    %cst_11 = arith.constant dense<0.000000e+00> : vector<32xf32>
    %13 = vector.multi_reduction <add>, %11, %cst_11 [0] : vector<8x32xf32> to vector<32xf32>
    %14 = vector.shape_cast %13 : vector<32xf32> to vector<1x32xf32>
    %cst_12 = arith.constant 0.899999976 : f32
    %15 = vector.broadcast %cst_12 : f32 to vector<32x32xf32>
    %16 = arith.mulf %15, %3 : vector<32x32xf32>
    %cst_13 = arith.constant 1.000000e-01 : f32
    %17 = vector.broadcast %cst_13 : f32 to vector<32x32xf32>
    %18 = arith.mulf %17, %12 : vector<32x32xf32>
    %19 = arith.addf %16, %18 : vector<32x32xf32>
    %cst_14 = arith.constant 9.990000e-01 : f32
    %20 = vector.broadcast %cst_14 : f32 to vector<32x32xf32>
    %21 = arith.mulf %20, %4 : vector<32x32xf32>
    %22 = arith.mulf %12, %12 : vector<32x32xf32>
    %cst_15 = arith.constant 1.000000e-03 : f32
    %23 = vector.broadcast %cst_15 : f32 to vector<32x32xf32>
    %24 = arith.mulf %23, %22 : vector<32x32xf32>
    %25 = arith.addf %21, %24 : vector<32x32xf32>
    %cst_16 = arith.constant 1.000000e-01 : f32
    %26 = vector.broadcast %cst_16 : f32 to vector<32x32xf32>
    %27 = arith.divf %19, %26 : vector<32x32xf32>
    %cst_17 = arith.constant 0.00999999977 : f32
    %28 = vector.broadcast %cst_17 : f32 to vector<32x32xf32>
    %29 = arith.mulf %28, %27 : vector<32x32xf32>
    %cst_18 = arith.constant 1.000000e-03 : f32
    %30 = vector.broadcast %cst_18 : f32 to vector<32x32xf32>
    %31 = arith.divf %25, %30 : vector<32x32xf32>
    %32 = math.sqrt %31 : vector<32x32xf32>
    %cst_19 = arith.constant 9.99999993E-9 : f32
    %33 = vector.broadcast %cst_19 : f32 to vector<32x32xf32>
    %34 = arith.addf %32, %33 : vector<32x32xf32>
    %35 = arith.divf %29, %34 : vector<32x32xf32>
    %36 = arith.subf %1, %35 : vector<32x32xf32>
    %cst_20 = arith.constant 0.899999976 : f32
    %37 = vector.broadcast %cst_20 : f32 to vector<1x32xf32>
    %38 = arith.mulf %37, %5 : vector<1x32xf32>
    %cst_21 = arith.constant 1.000000e-01 : f32
    %39 = vector.broadcast %cst_21 : f32 to vector<1x32xf32>
    %40 = arith.mulf %39, %14 : vector<1x32xf32>
    %41 = arith.addf %38, %40 : vector<1x32xf32>
    %cst_22 = arith.constant 9.990000e-01 : f32
    %42 = vector.broadcast %cst_22 : f32 to vector<1x32xf32>
    %43 = arith.mulf %42, %6 : vector<1x32xf32>
    %44 = arith.mulf %14, %14 : vector<1x32xf32>
    %cst_23 = arith.constant 1.000000e-03 : f32
    %45 = vector.broadcast %cst_23 : f32 to vector<1x32xf32>
    %46 = arith.mulf %45, %44 : vector<1x32xf32>
    %47 = arith.addf %43, %46 : vector<1x32xf32>
    %cst_24 = arith.constant 1.000000e-01 : f32
    %48 = vector.broadcast %cst_24 : f32 to vector<1x32xf32>
    %49 = arith.divf %41, %48 : vector<1x32xf32>
    %cst_25 = arith.constant 0.00999999977 : f32
    %50 = vector.broadcast %cst_25 : f32 to vector<1x32xf32>
    %51 = arith.mulf %50, %49 : vector<1x32xf32>
    %cst_26 = arith.constant 1.000000e-03 : f32
    %52 = vector.broadcast %cst_26 : f32 to vector<1x32xf32>
    %53 = arith.divf %47, %52 : vector<1x32xf32>
    %54 = math.sqrt %53 : vector<1x32xf32>
    %cst_27 = arith.constant 9.99999993E-9 : f32
    %55 = vector.broadcast %cst_27 : f32 to vector<1x32xf32>
    %56 = arith.addf %54, %55 : vector<1x32xf32>
    %57 = arith.divf %51, %56 : vector<1x32xf32>
    %58 = arith.subf %2, %57 : vector<1x32xf32>
    %cst_28 = arith.constant dense<0.000000e+00> : vector<8x32xf32>
    %59 = tpu.matmul %0, %36, %cst_28 {dimension_numbers = #tpu.dot_dimension_numbers<[1], [0], [0], [1], [0, 0, 1, 1], [], []>} : vector<8x32xf32>, vector<32x32xf32>, vector<8x32xf32> -> vector<8x32xf32>
    %60 = vector.broadcast %58 : vector<1x32xf32> to vector<8x32xf32>
    %61 = arith.addf %59, %60 : vector<8x32xf32>
    %cst_29 = arith.constant 7.812500e-03 : f32
    %62 = vector.broadcast %cst_29 : f32 to vector<8x32xf32>
    %63 = arith.mulf %62, %61 : vector<8x32xf32>
    %cst_30 = arith.constant dense<0.000000e+00> : vector<32x32xf32>
    %64 = tpu.matmul %0, %63, %cst_30 {dimension_numbers = #tpu.dot_dimension_numbers<[0], [0], [1], [1], [0, 1, 1, 1], [], []>} : vector<8x32xf32>, vector<8x32xf32>, vector<32x32xf32> -> vector<32x32xf32>
    %cst_31 = arith.constant dense<0.000000e+00> : vector<32xf32>
    %65 = vector.multi_reduction <add>, %63, %cst_31 [0] : vector<8x32xf32> to vector<32xf32>
    %66 = vector.shape_cast %65 : vector<32xf32> to vector<1x32xf32>
    %cst_32 = arith.constant 0.899999976 : f32
    %67 = vector.broadcast %cst_32 : f32 to vector<32x32xf32>
    %68 = arith.mulf %67, %19 : vector<32x32xf32>
    %cst_33 = arith.constant 1.000000e-01 : f32
    %69 = vector.broadcast %cst_33 : f32 to vector<32x32xf32>
    %70 = arith.mulf %69, %64 : vector<32x32xf32>
    %71 = arith.addf %68, %70 : vector<32x32xf32>
    %cst_34 = arith.constant 9.990000e-01 : f32
    %72 = vector.broadcast %cst_34 : f32 to vector<32x32xf32>
    %73 = arith.mulf %72, %25 : vector<32x32xf32>
    %74 = arith.mulf %64, %64 : vector<32x32xf32>
    %cst_35 = arith.constant 1.000000e-03 : f32
    %75 = vector.broadcast %cst_35 : f32 to vector<32x32xf32>
    %76 = arith.mulf %75, %74 : vector<32x32xf32>
    %77 = arith.addf %73, %76 : vector<32x32xf32>
    %cst_36 = arith.constant 1.900000e-01 : f32
    %78 = vector.broadcast %cst_36 : f32 to vector<32x32xf32>
    %79 = arith.divf %71, %78 : vector<32x32xf32>
    %cst_37 = arith.constant 0.00999999977 : f32
    %80 = vector.broadcast %cst_37 : f32 to vector<32x32xf32>
    %81 = arith.mulf %80, %79 : vector<32x32xf32>
    %cst_38 = arith.constant 1.999000e-03 : f32
    %82 = vector.broadcast %cst_38 : f32 to vector<32x32xf32>
    %83 = arith.divf %77, %82 : vector<32x32xf32>
    %84 = math.sqrt %83 : vector<32x32xf32>
    %cst_39 = arith.constant 9.99999993E-9 : f32
    %85 = vector.broadcast %cst_39 : f32 to vector<32x32xf32>
    %86 = arith.addf %84, %85 : vector<32x32xf32>
    %87 = arith.divf %81, %86 : vector<32x32xf32>
    %88 = arith.subf %36, %87 : vector<32x32xf32>
    %cst_40 = arith.constant 0.899999976 : f32
    %89 = vector.broadcast %cst_40 : f32 to vector<1x32xf32>
    %90 = arith.mulf %89, %41 : vector<1x32xf32>
    %cst_41 = arith.constant 1.000000e-01 : f32
    %91 = vector.broadcast %cst_41 : f32 to vector<1x32xf32>
    %92 = arith.mulf %91, %66 : vector<1x32xf32>
    %93 = arith.addf %90, %92 : vector<1x32xf32>
    %cst_42 = arith.constant 9.990000e-01 : f32
    %94 = vector.broadcast %cst_42 : f32 to vector<1x32xf32>
    %95 = arith.mulf %94, %47 : vector<1x32xf32>
    %96 = arith.mulf %66, %66 : vector<1x32xf32>
    %cst_43 = arith.constant 1.000000e-03 : f32
    %97 = vector.broadcast %cst_43 : f32 to vector<1x32xf32>
    %98 = arith.mulf %97, %96 : vector<1x32xf32>
    %99 = arith.addf %95, %98 : vector<1x32xf32>
    %cst_44 = arith.constant 1.900000e-01 : f32
    %100 = vector.broadcast %cst_44 : f32 to vector<1x32xf32>
    %101 = arith.divf %93, %100 : vector<1x32xf32>
    %cst_45 = arith.constant 0.00999999977 : f32
    %102 = vector.broadcast %cst_45 : f32 to vector<1x32xf32>
    %103 = arith.mulf %102, %101 : vector<1x32xf32>
    %cst_46 = arith.constant 1.999000e-03 : f32
    %104 = vector.broadcast %cst_46 : f32 to vector<1x32xf32>
    %105 = arith.divf %99, %104 : vector<1x32xf32>
    %106 = math.sqrt %105 : vector<1x32xf32>
    %cst_47 = arith.constant 9.99999993E-9 : f32
    %107 = vector.broadcast %cst_47 : f32 to vector<1x32xf32>
    %108 = arith.addf %106, %107 : vector<1x32xf32>
    %109 = arith.divf %103, %108 : vector<1x32xf32>
    %110 = arith.subf %58, %109 : vector<1x32xf32>
    %cst_48 = arith.constant dense<0.000000e+00> : vector<8x32xf32>
    %111 = tpu.matmul %0, %88, %cst_48 {dimension_numbers = #tpu.dot_dimension_numbers<[1], [0], [0], [1], [0, 0, 1, 1], [], []>} : vector<8x32xf32>, vector<32x32xf32>, vector<8x32xf32> -> vector<8x32xf32>
    %112 = vector.broadcast %110 : vector<1x32xf32> to vector<8x32xf32>
    %113 = arith.addf %111, %112 : vector<8x32xf32>
    %114 = arith.mulf %113, %113 : vector<8x32xf32>
    %115 = vector.shape_cast %114 : vector<8x32xf32> to vector<1x8x32xf32>
    %cst_49 = arith.constant dense<0.000000e+00> : vector<1xf32>
    %116 = vector.multi_reduction <add>, %115, %cst_49 [1, 2] : vector<1x8x32xf32> to vector<1xf32>
    %117 = vector.shape_cast %116 : vector<1xf32> to vector<1x1x1xf32>
    %118 = vector.extract %117[0, 0, 0] : f32 from vector<1x1x1xf32>
    %cst_50 = arith.constant 3.906250e-03 : f32
    %119 = arith.mulf %118, %cst_50 : f32
    %cst_51 = arith.constant 7.812500e-03 : f32
    %120 = vector.broadcast %cst_51 : f32 to vector<8x32xf32>
    %121 = arith.mulf %120, %113 : vector<8x32xf32>
    %cst_52 = arith.constant dense<0.000000e+00> : vector<32x32xf32>
    %122 = tpu.matmul %0, %121, %cst_52 {dimension_numbers = #tpu.dot_dimension_numbers<[0], [0], [1], [1], [0, 1, 1, 1], [], []>} : vector<8x32xf32>, vector<8x32xf32>, vector<32x32xf32> -> vector<32x32xf32>
    %cst_53 = arith.constant dense<0.000000e+00> : vector<32xf32>
    %123 = vector.multi_reduction <add>, %121, %cst_53 [0] : vector<8x32xf32> to vector<32xf32>
    %124 = vector.shape_cast %123 : vector<32xf32> to vector<1x32xf32>
    %cst_54 = arith.constant 0.899999976 : f32
    %125 = vector.broadcast %cst_54 : f32 to vector<32x32xf32>
    %126 = arith.mulf %125, %71 : vector<32x32xf32>
    %cst_55 = arith.constant 1.000000e-01 : f32
    %127 = vector.broadcast %cst_55 : f32 to vector<32x32xf32>
    %128 = arith.mulf %127, %122 : vector<32x32xf32>
    %129 = arith.addf %126, %128 : vector<32x32xf32>
    %cst_56 = arith.constant 9.990000e-01 : f32
    %130 = vector.broadcast %cst_56 : f32 to vector<32x32xf32>
    %131 = arith.mulf %130, %77 : vector<32x32xf32>
    %132 = arith.mulf %122, %122 : vector<32x32xf32>
    %cst_57 = arith.constant 1.000000e-03 : f32
    %133 = vector.broadcast %cst_57 : f32 to vector<32x32xf32>
    %134 = arith.mulf %133, %132 : vector<32x32xf32>
    %135 = arith.addf %131, %134 : vector<32x32xf32>
    %cst_58 = arith.constant 2.710000e-01 : f32
    %136 = vector.broadcast %cst_58 : f32 to vector<32x32xf32>
    %137 = arith.divf %129, %136 : vector<32x32xf32>
    %cst_59 = arith.constant 0.00999999977 : f32
    %138 = vector.broadcast %cst_59 : f32 to vector<32x32xf32>
    %139 = arith.mulf %138, %137 : vector<32x32xf32>
    %cst_60 = arith.constant 0.00299700093 : f32
    %140 = vector.broadcast %cst_60 : f32 to vector<32x32xf32>
    %141 = arith.divf %135, %140 : vector<32x32xf32>
    %142 = math.sqrt %141 : vector<32x32xf32>
    %cst_61 = arith.constant 9.99999993E-9 : f32
    %143 = vector.broadcast %cst_61 : f32 to vector<32x32xf32>
    %144 = arith.addf %142, %143 : vector<32x32xf32>
    %145 = arith.divf %139, %144 : vector<32x32xf32>
    %146 = arith.subf %88, %145 : vector<32x32xf32>
    %cst_62 = arith.constant 0.899999976 : f32
    %147 = vector.broadcast %cst_62 : f32 to vector<1x32xf32>
    %148 = arith.mulf %147, %93 : vector<1x32xf32>
    %cst_63 = arith.constant 1.000000e-01 : f32
    %149 = vector.broadcast %cst_63 : f32 to vector<1x32xf32>
    %150 = arith.mulf %149, %124 : vector<1x32xf32>
    %151 = arith.addf %148, %150 : vector<1x32xf32>
    %cst_64 = arith.constant 9.990000e-01 : f32
    %152 = vector.broadcast %cst_64 : f32 to vector<1x32xf32>
    %153 = arith.mulf %152, %99 : vector<1x32xf32>
    %154 = arith.mulf %124, %124 : vector<1x32xf32>
    %cst_65 = arith.constant 1.000000e-03 : f32
    %155 = vector.broadcast %cst_65 : f32 to vector<1x32xf32>
    %156 = arith.mulf %155, %154 : vector<1x32xf32>
    %157 = arith.addf %153, %156 : vector<1x32xf32>
    %cst_66 = arith.constant 2.710000e-01 : f32
    %158 = vector.broadcast %cst_66 : f32 to vector<1x32xf32>
    %159 = arith.divf %151, %158 : vector<1x32xf32>
    %cst_67 = arith.constant 0.00999999977 : f32
    %160 = vector.broadcast %cst_67 : f32 to vector<1x32xf32>
    %161 = arith.mulf %160, %159 : vector<1x32xf32>
    %cst_68 = arith.constant 0.00299700093 : f32
    %162 = vector.broadcast %cst_68 : f32 to vector<1x32xf32>
    %163 = arith.divf %157, %162 : vector<1x32xf32>
    %164 = math.sqrt %163 : vector<1x32xf32>
    %cst_69 = arith.constant 9.99999993E-9 : f32
    %165 = vector.broadcast %cst_69 : f32 to vector<1x32xf32>
    %166 = arith.addf %164, %165 : vector<1x32xf32>
    %167 = arith.divf %161, %166 : vector<1x32xf32>
    %168 = arith.subf %110, %167 : vector<1x32xf32>
    %cst_70 = arith.constant dense<0.000000e+00> : vector<8x32xf32>
    %169 = tpu.matmul %0, %146, %cst_70 {dimension_numbers = #tpu.dot_dimension_numbers<[1], [0], [0], [1], [0, 0, 1, 1], [], []>} : vector<8x32xf32>, vector<32x32xf32>, vector<8x32xf32> -> vector<8x32xf32>
    %170 = vector.broadcast %168 : vector<1x32xf32> to vector<8x32xf32>
    %171 = arith.addf %169, %170 : vector<8x32xf32>
    %c0_71 = arith.constant 0 : index
    %c0_72 = arith.constant 0 : index
    %172 = vector.load %arg3[%c0_71, %c0_72] : memref<8x32xf32, #tpu.memory_space<vmem>>, vector<8x32xf32>
    tpu.vector_store %arg3[%c0_71, %c0_72], %171 {strides = array<i32>} : memref<8x32xf32, #tpu.memory_space<vmem>>, vector<8x32xf32>,
    %c0_73 = arith.constant 0 : index
    %173 = memref.load %arg4[%c0_73] : memref<1xf32, #tpu.memory_space<smem>>
    memref.store %119, %arg4[%c0_73] : memref<1xf32, #tpu.memory_space<smem>>
    return
  }
}

</mosaic_0001>

<bundles_post_ra>
// kernel: tpu_custom_call.1
= control target key start
LH: loop header
LB: loop body
LE: loop exit
PB: predicated region body
PF: predicated region fallthrough
CT: control target
= control target key end

     0   :  { %10 = vsyncpa [#allocation3], 0  ;;  %s1590_s0 = inlined_call_operand.hbm [shape: f32[8,32], index: 0, kind: input, shape index: {}]   ;;  %s1591_s1 = inlined_call_operand.hbm [shape: f32[32,32], index: 1, kind: input, shape index: {}]   ;;  %s1592_s2 = inlined_call_operand.vmem [shape: f32[1,32], index: 2, kind: input, shape index: {}]   ;;  %s1593_s3 = inlined_call_operand.hbm [shape: f32[8,32], index: 3, kind: output, shape index: {0}]   ;;  %s1594_s4 = inlined_call_operand.hbm [shape: f32[1], index: 4, kind: output, shape index: {1}]  }
   0x1   :  { %11 = vsyncpa [#allocation7], 0 }
   0x2   :  { %12 = vsyncpa [#allocation4], 0 }
   0x3   :  { %13 = vsyncpa [#allocation5], 0  ;;  %s19_s17 = sshll.u32 %s1590_s0, 4  ;;  %s1168_s18 = smov [#allocation2]   ;;  %s20_s17 = int_to_ptr.hbm [resolvable:$true] %s19_s17 }
   0x4   :  { %s21_s19 = sshll.u32 %s1168_s18, 4  ;;  %s29_s22 = sshll.u32 %s1591_s1, 4  ;;  %s22_s19 = int_to_ptr.vmem [resolvable:$true] %s21_s19  ;;  %s30_s22 = int_to_ptr.hbm [resolvable:$true] %s29_s22 }
   0x5   :  { %24 = dma.hbm_to_vmem [thread:$0]  %s20_s17, 128, %s22_s19, [#allocation3]  }
   0x6   :  { %s1169_s23 = smov [#allocation6]   ;;  %s1170_s25 = smov 128  }
   0x7   :  { %s31_s24 = sshll.u32 %s1169_s23, 4  ;;  %s1171_s26 = smov 8   ;;  %s32_s24 = int_to_ptr.vmem [resolvable:$true] %s31_s24 }
   0x8   :  { %37 = dma.hbm_to_vmem [thread:$0]  %s30_s22, 512, %s32_s24, [#allocation7], %s1170_s25, %s1170_s25, %s1171_s26  }
   0x9   :  { %1160 = dma.done.wait [#allocation3], 128  }
   0xa   :  { %1161 = vsyncadd [#allocation3], 4294967168 }
   0xb   :  { %1162 = dma.done.wait [#allocation7], 512  }
   0xc   :  { %1163 = vsyncadd [#allocation7], 4294966784  ;;  %v1211_v0 = vld [vmem:[#allocation6 + $0x18] sm:$0xff]  ;;  %v1215_v2 = vld [vmem:[#allocation6 + $0x10] sm:$0xff]  ;;  %vm57_vm0 = vcmask 261120   ;;  %vm114_vm1 = vcmask 64512  }
   0xd   :  { %v1213_v1 = vld [vmem:[#allocation2] sm:$0xff]  ;;  %73 = vmatpush.msra.mxu0 %v1211_v0  ;;  %v1219_v3 = vld [vmem:[#allocation6 + $0x8] sm:$0xff]  ;;  %v1222_v4 = vld [vmem:[#allocation6] sm:$0xff]  ;;  %v1172_v13 = vmov 0.001   ;;  %s954_s6 = sshll.u32 %s1594_s4, 4  ;;  %s955_s6 = int_to_ptr.hbm [resolvable:$true] %s954_s6 }
   0xe   :  { %82 = vxpose.xlu0.b32.start.end [1/1] (short) (narrow) %v1213_v1, 32  ;;  %v1002_v5 = vld [vmem:[%s1592_s2] ss:$0 sm:$0xff]  ;;  %1003 = vrcp.f32 %v1172_v13  ;;  %v1173_v49 = vmov 0.1   ;;  %s1178_s7 = smov [#allocation9]  }
   0xf   :  { %74 = vmatpush.msra.mxu0 %v1215_v2  ;;  %s1179_s8 = smov [#allocation8]   ;;  %s945_s12 = sshll.u32 %s1593_s3, 4  ;;  %s946_s12 = int_to_ptr.hbm [resolvable:$true] %s945_s12 }
  0x10   :  { %s943_s9 = sshll.u32 %s1179_s8, 4  ;;  %s944_s9 = int_to_ptr.vmem [resolvable:$true] %s943_s9 }
  0x11   :  { %75 = vmatpush.msra.mxu0 %v1219_v3 }
  0x13   :  { %76 = vmatpush.msra.mxu0 %v1222_v4 }
  0x14   :  { %971 = vmatmul.msk.f32.vlgmr.msra.gmra.mxu0 %vm57_vm0, %v1213_v1  ;;  %v1004_v14 = vpop.eup %1003 }
  0x15   :  { %v199_v15 = vmul.f32 0.001, %v1004_v14  ;;  %vm203_vm2 = vweird.f32 %v1004_v14 }
  0x17   :  { %v200_v16 = vsub.f32 1.0, %v199_v15 }
  0x19   :  { %v201_v17 = vmul.f32 %v1004_v14, %v200_v16 }
  0x1b   :  { %v202_v19 = vadd.f32 %v1004_v14, %v201_v17 }
  0x1d   :  { %v1256_v22 = vsel %vm203_vm2, %v1004_v14, %v202_v19 }
  0x91   :  { %v78_v6 = vpop.f32.mrf.mxu0 }
  0x92   :  { %v79_v7 = vadd.f32 %v1002_v5, %v78_v6 }
  0x94   :  { %v1231_v8 = vmul.f32 0.0078125, %v79_v7 }
  0x96   :  { %142 = vmatpush.msra.mxu1 %v1231_v8 }
  0xb2   :  { %v1234_v9 = vpop.trf.xlu0 }
  0xb3   :  { %972 = vmatmul.msk.f32.vlgmr.msra.gmra.mxu1 %vm114_vm1, %v1234_v9 }
  0xba   :  { %v1238_v10 = vpop.trf.xlu0 }
  0xbb   :  { %973 = vmatmul.msk.f32.gmra.mxu1 %vm114_vm1, %v1238_v10 }
  0xc2   :  { %v1242_v11 = vpop.trf.xlu0 }
  0xc3   :  { %974 = vmatmul.msk.f32.gmra.mxu1 %vm114_vm1, %v1242_v11 }
  0xca   :  { %v1246_v12 = vpop.trf.xlu0 }
  0xcb   :  { %975 = vmatmul.msk.f32.gmra.mxu1 %vm114_vm1, %v1246_v12 }
 0x130   :  { %v1250_v18 = vpop.f32.mrf.mxu1 }
 0x131   :  { %v171_v20 = vmul.f32 %v1250_v18, %v1250_v18 }
 0x133   :  { %v1254_v21 = vmul.f32 0.001, %v171_v20 }
 0x135   :  { %v205_v23 = vmul.f32 %v1256_v22, %v1254_v21 }
 0x137   :  { %1005 = vrsqrt.f32 %v205_v23  ;;  %vm216_vm3 = vcmp.eq.f32.partialorder %v205_v23, inf  ;;  %v219_v58 = vand.u32 2147483648, %v205_v23  ;;  %vm218_vm6 = vcmp.eq.f32.partialorder %v205_v23, 0.0 }
 0x138   :  { %v1260_v24 = vpop.f32.mrf.mxu1 }
 0x139   :  { %v172_v25 = vmul.f32 %v1260_v24, %v1260_v24 }
 0x13b   :  { %v1264_v26 = vmul.f32 0.001, %v172_v25 }
 0x13d   :  { %v1006_v27 = vpop.eup %1005  ;;  %v206_v28 = vmul.f32 %v1256_v22, %v1264_v26 }
 0x13e   :  { %v210_v29 = vmul.f32 %v1006_v27, %v205_v23 }
 0x13f   :  { %1007 = vrsqrt.f32 %v206_v28  ;;  %vm228_vm4 = vcmp.eq.f32.partialorder %v206_v28, inf  ;;  %v231_v54 = vand.u32 2147483648, %v206_v28  ;;  %vm230_vm5 = vcmp.eq.f32.partialorder %v206_v28, 0.0 }
 0x140   :  { %v211_v30 = vmul.f32 %v1006_v27, %v210_v29  ;;  %v1268_v31 = vpop.f32.mrf.mxu1 }
 0x141   :  { %v173_v32 = vmul.f32 %v1268_v31, %v1268_v31 }
 0x142   :  { %v212_v33 = vmul.f32 0.5, %v211_v30 }
 0x143   :  { %v1272_v34 = vmul.f32 0.001, %v173_v32 }
 0x144   :  { %v213_v37 = vsub.f32 1.5, %v212_v33 }
 0x145   :  { %v1008_v35 = vpop.eup %1007  ;;  %v207_v36 = vmul.f32 %v1256_v22, %v1272_v34 }
 0x146   :  { %v222_v38 = vmul.f32 %v1008_v35, %v206_v28  ;;  %v214_v42 = vmul.f32 %v1006_v27, %v213_v37 }
 0x147   :  { %1009 = vrsqrt.f32 %v207_v36  ;;  %vm240_vm7 = vcmp.eq.f32.partialorder %v207_v36, inf  ;;  %v243_v17 = vand.u32 2147483648, %v207_v36  ;;  %vm242_vm8 = vcmp.eq.f32.partialorder %v207_v36, 0.0 }
 0x148   :  { %v223_v39 = vmul.f32 %v1008_v35, %v222_v38  ;;  %v1276_v40 = vpop.f32.mrf.mxu1  ;;  %v215_v48 = vmul.f32 %v214_v42, %v205_v23  ;;  %1011 = vrcp.f32 %v1173_v49 }
 0x149   :  { %v174_v41 = vmul.f32 %v1276_v40, %v1276_v40 }
 0x14a   :  { %v224_v43 = vmul.f32 0.5, %v223_v39  ;;  %v217_v55 = vsel %vm216_vm3, %v205_v23, %v215_v48 }
 0x14b   :  { %v1280_v44 = vmul.f32 0.001, %v174_v41  ;;  %v220_v62 = vsel %vm218_vm6, %v219_v58, %v217_v55 }
 0x14c   :  { %v225_v45 = vsub.f32 1.5, %v224_v43  ;;  %v1286_v14 = vadd.f32 1e-08, %v220_v62  ;;  %v1300_v43 = vmul.f32 0.1, %v1268_v31 }
 0x14d   :  { %v1010_v46 = vpop.eup %1009  ;;  %v208_v47 = vmul.f32 %v1256_v22, %v1280_v44 }
 0x14e   :  { %v234_v50 = vmul.f32 %v1010_v46, %v207_v36  ;;  %v226_v51 = vmul.f32 %v1008_v35, %v225_v45  ;;  %v1012_v60 = vpop.eup %1011  ;;  %vm266_vm6 = vweird.f32 %v1286_v14 }
 0x14f   :  { %1013 = vrsqrt.f32 %v208_v47  ;;  %v184_v13 = vmul.f32 0.1, %v1012_v60  ;;  %vm252_vm9 = vcmp.eq.f32.partialorder %v208_v47, inf  ;;  %vm254_vm10 = vcmp.eq.f32.partialorder %v208_v47, 0.0 }
 0x150   :  { %v235_v52 = vmul.f32 %v1010_v46, %v234_v50  ;;  %v227_v53 = vmul.f32 %v226_v51, %v206_v28  ;;  %vm188_vm11 = vweird.f32 %v1012_v60  ;;  %v1308_v51 = vmul.f32 0.1, %v1250_v18 }
 0x151   :  { %v185_v23 = vsub.f32 1.0, %v184_v13 }
 0x152   :  { %v236_v56 = vmul.f32 0.5, %v235_v52  ;;  %v229_v57 = vsel %vm228_vm4, %v206_v28, %v227_v53  ;;  %v1311_v52 = vmul.f32 0.1, %v1260_v24 }
 0x153   :  { %v232_v59 = vsel %vm230_vm5, %v231_v54, %v229_v57  ;;  %v186_v30 = vmul.f32 %v1012_v60, %v185_v23  ;;  %v1316_v54 = vmul.f32 0.1, %v1276_v40 }
 0x154   :  { %v237_v61 = vsub.f32 1.5, %v236_v56  ;;  %v1284_v7 = vadd.f32 1e-08, %v232_v59 }
 0x155   :  { %v1014_v63 = vpop.eup %1013  ;;  %v187_v38 = vadd.f32 %v1012_v60, %v186_v30  ;;  %v272_v30 = vand.u32 2147483648, %v1286_v14 }
 0x156   :  { %v246_v5 = vmul.f32 %v1014_v63, %v208_v47  ;;  %v238_v6 = vmul.f32 %v1010_v46, %v237_v61  ;;  %1015 = vrcp.f32 %v1284_v7  ;;  %vm281_vm13 = vweird.f32 %v1284_v7 }
 0x157   :  { %1017 = vrcp.f32 %v1286_v14  ;;  %v1305_v49 = vsel %vm188_vm11, %v1012_v60, %v187_v38 }
 0x158   :  { %v247_v15 = vmul.f32 %v1014_v63, %v246_v5  ;;  %v239_v16 = vmul.f32 %v238_v6, %v207_v36  ;;  %v192_v31 = vmul.f32 %v1305_v49, %v1300_v43  ;;  %v190_v58 = vmul.f32 %v1305_v49, %v1308_v51 }
 0x159   :  { %v191_v18 = vmul.f32 %v1305_v49, %v1311_v52  ;;  %v193_v60 = vmul.f32 %v1305_v49, %v1316_v54 }
 0x15a   :  { %v248_v19 = vmul.f32 0.5, %v247_v15  ;;  %v241_v20 = vsel %vm240_vm7, %v207_v36, %v239_v16  ;;  %v255_v36 = vand.u32 2147483648, %v208_v47  ;;  %v196_v59 = vmul.f32 0.01, %v192_v31 }
 0x15b   :  { %v244_v25 = vsel %vm242_vm8, %v243_v17, %v241_v20  ;;  %v285_v16 = vand.u32 2147483647, %v1284_v7  ;;  %v287_v17 = vand.u32 2147483648, %v1284_v7 }
 0x15c   :  { %v249_v27 = vsub.f32 1.5, %v248_v19  ;;  %v1290_v28 = vadd.f32 1e-08, %v244_v25  ;;  %v1293_v32 = vpop.eup %1015 }
 0x15d   :  { %v1295_v35 = vpop.eup %1017  ;;  %v277_v41 = vmul.f32 %v1293_v32, %v1284_v7  ;;  %vm282_vm14 = vweird.f32 %v1293_v32 }
 0x15e   :  { %v250_v29 = vmul.f32 %v1014_v63, %v249_v27  ;;  %1019 = vrcp.f32 %v1290_v28  ;;  %v262_v46 = vmul.f32 %v1295_v35, %v1286_v14  ;;  %v302_v40 = vand.u32 2147483648, %v1290_v28  ;;  %vm1346_vm5 = vmor %vm281_vm13, %vm282_vm14 }
 0x15f   :  { %v278_v50 = vsub.f32 1.0, %v277_v41  ;;  %vm267_vm15 = vweird.f32 %v1295_v35  ;;  %vm296_vm2 = vweird.f32 %v1290_v28  ;;  %v300_v5 = vand.u32 2147483647, %v1290_v28 }
 0x160   :  { %v251_v33 = vmul.f32 %v250_v29, %v208_v47  ;;  %v263_v53 = vsub.f32 1.0, %v262_v46  ;;  %v303_v27 = vor.u32 1.1754944e-38, %v302_v40  ;;  %v270_v29 = vand.u32 2147483647, %v1286_v14 }
 0x161   :  { %v279_v56 = vmul.f32 %v1293_v32, %v278_v50  ;;  %vm301_vm8 = vcmp.eq.f32.partialorder %v300_v5, 8.507059e+37  ;;  %v288_v41 = vor.u32 1.1754944e-38, %v287_v17  ;;  %v273_v46 = vor.u32 1.1754944e-38, %v272_v30 }
 0x162   :  { %v253_v37 = vsel %vm252_vm9, %v208_v47, %v251_v33  ;;  %v264_v24 = vmul.f32 %v1295_v35, %v263_v53  ;;  %vm1358_vm9 = vmor %vm266_vm6, %vm267_vm15  ;;  %vm271_vm13 = vcmp.eq.f32.partialorder %v270_v29, 8.507059e+37  ;;  %v194_v53 = vmul.f32 0.01, %v190_v58 }
 0x163   :  { %v256_v39 = vsel %vm254_vm10, %v255_v36, %v253_v37  ;;  %v280_v6 = vadd.f32 %v1293_v32, %v279_v56  ;;  %v197_v37 = vmul.f32 0.01, %v193_v60 }
 0x164   :  { %v1020_v42 = vpop.eup %1019  ;;  %v260_v45 = vadd.f32 1e-08, %v256_v39  ;;  %v265_v19 = vadd.f32 %v1295_v35, %v264_v24 }
 0x165   :  { %v292_v48 = vmul.f32 %v1020_v42, %v1290_v28  ;;  %vm297_vm12 = vweird.f32 %v1020_v42  ;;  %v284_v36 = vsel %vm1346_vm5, %v1293_v32, %v280_v6 }
 0x166   :  { %1021 = vrcp.f32 %v260_v45  ;;  %v317_v13 = vand.u32 2147483648, %v260_v45  ;;  %vm1333_vm3 = vmor %vm296_vm2, %vm297_vm12  ;;  %v315_v23 = vand.u32 2147483647, %v260_v45  ;;  %vm311_vm7 = vweird.f32 %v260_v45 }
 0x167   :  { %v293_v47 = vsub.f32 1.0, %v292_v48  ;;  %vm286_vm12 = vcmp.eq.f32.partialorder %v285_v16, 8.507059e+37  ;;  %v269_v14 = vsel %vm1358_vm9, %v1295_v35, %v265_v19  ;;  %v195_v48 = vmul.f32 0.01, %v191_v18 }
 0x168   :  { %v318_v38 = vor.u32 1.1754944e-38, %v317_v13  ;;  %vm316_vm11 = vcmp.eq.f32.partialorder %v315_v23, 8.507059e+37  ;;  %v289_v32 = vsel %vm286_vm12, %v288_v41, %v284_v36  ;;  %v274_v31 = vsel %vm271_vm13, %v273_v46, %v269_v14  ;;  %v53_v14 = vld [vmem:[%s1592_s2] sm:$0x1] }
 0x169   :  { %v294_v55 = vmul.f32 %v1020_v42, %v293_v47  ;;  %v290_v56 = vmul.f32 %v289_v32, %v195_v48  ;;  %v275_v24 = vmul.f32 %v274_v31, %v194_v53  ;;  %v1174_v32 = vmov 0.001999  }
 0x16b   :  { %v295_v62 = vadd.f32 %v1020_v42, %v294_v55  ;;  %v1374_v35 = vsub.f32 %v1219_v3, %v290_v56  ;;  %v1378_v18 = vsub.f32 %v1222_v4, %v275_v24 }
 0x16c   :  { %v1022_v57 = vpop.eup %1021 }
 0x16d   :  { %v307_v61 = vmul.f32 %v1022_v57, %v260_v45  ;;  %vm312_vm4 = vweird.f32 %v1022_v57  ;;  %v299_v25 = vsel %vm1333_vm3, %v1020_v42, %v295_v62 }
 0x16e   :  { %vm313_vm10 = vmor %vm311_vm7, %vm312_vm4  ;;  %v304_v39 = vsel %vm301_vm8, %v303_v27, %v299_v25 }
 0x16f   :  { %v308_v63 = vsub.f32 1.0, %v307_v61  ;;  %v305_v50 = vmul.f32 %v304_v39, %v196_v59 }
 0x171   :  { %v309_v20 = vmul.f32 %v1022_v57, %v308_v63 }
 0x173   :  { %v310_v33 = vadd.f32 %v1022_v57, %v309_v20 }
 0x175   :  { %v314_v42 = vsel %vm313_vm10, %v1022_v57, %v310_v33  ;;  %v1370_v57 = vsub.f32 %v1215_v2, %v305_v50 }
 0x176   :  { %v319_v45 = vsel %vm316_vm11, %v318_v38, %v314_v42 }
 0x177   :  { %v320_v47 = vmul.f32 %v319_v45, %v197_v37 }
 0x179   :  { %v1366_v55 = vsub.f32 %v1211_v0, %v320_v47  ;;  %v156_v0 = vsel %vm57_vm0, %v1231_v8, 0.0 }
 0x17a   :  { %v157_v2 = vrot.slane %v156_v0, 4 }
 0x17b   :  { %377 = vmatpush.msrb.mxu0 %v1366_v55 }
 0x17c   :  { %v158_v58 = vadd.f32 %v157_v2, %v156_v0 }
 0x17d   :  { %378 = vmatpush.msrb.mxu0 %v1370_v57 }
 0x17e   :  { %v159_v59 = vrot.slane %v158_v58, 2 }
 0x17f   :  { %379 = vmatpush.msrb.mxu0 %v1374_v35 }
 0x180   :  { %v160_v60 = vadd.f32 %v159_v59, %v158_v58 }
 0x181   :  { %380 = vmatpush.msrb.mxu0 %v1378_v18 }
 0x182   :  { %976 = vmatmul.msk.f32.vlgmr.msrb.gmra.mxu0 %vm57_vm0, %v1213_v1  ;;  %v161_v61 = vrot.slane %v160_v60, 1 }
 0x184   :  { %v162_v3 = vadd.f32 %v161_v61, %v160_v60 }
 0x186   :  { %v327_v62 = vmul.f32 %v162_v3, %v162_v3 }
 0x188   :  { %v328_v40 = vmul.f32 0.001, %v327_v62 }
 0x18a   :  { %v332_v63 = vmul.f32 %v328_v40, %v1256_v22  ;;  %v325_v22 = vmul.f32 0.1, %v162_v3 }
 0x18c   :  { %1023 = vrsqrt.f32 %v332_v63  ;;  %vm340_vm14 = vcmp.eq.f32.partialorder %v332_v63, inf  ;;  %v343_v8 = vand.u32 2147483648, %v332_v63  ;;  %vm342_vm15 = vcmp.eq.f32.partialorder %v332_v63, 0.0 }
 0x18d   :  { %v330_v7 = vmul.f32 %v325_v22, %v1305_v49  ;;  %v592_v62 = vmul.f32 0.9, %v325_v22 }
 0x18f   :  { %v331_v41 = vmul.f32 0.01, %v330_v7 }
 0x192   :  { %v1024_v4 = vpop.eup %1023 }
 0x193   :  { %v334_v5 = vmul.f32 %v1024_v4, %v332_v63 }
 0x195   :  { %v335_v6 = vmul.f32 %v1024_v4, %v334_v5  ;;  %v595_v5 = vmul.f32 0.999, %v328_v40 }
 0x197   :  { %v336_v13 = vmul.f32 0.5, %v335_v6 }
 0x199   :  { %v337_v15 = vsub.f32 1.5, %v336_v13 }
 0x19b   :  { %v338_v16 = vmul.f32 %v1024_v4, %v337_v15 }
 0x19d   :  { %v339_v17 = vmul.f32 %v338_v16, %v332_v63 }
 0x19f   :  { %v341_v19 = vsel %vm340_vm14, %v332_v63, %v339_v17 }
 0x1a0   :  { %v344_v20 = vsel %vm342_vm15, %v343_v8, %v341_v19  ;;  %v1175_v19 = vmov 0.19  }
 0x1a1   :  { %v345_v23 = vadd.f32 1e-08, %v344_v20 }
 0x1a3   :  { %1025 = vrcp.f32 %v345_v23  ;;  %v357_v33 = vand.u32 2147483648, %v345_v23  ;;  %vm351_vm3 = vweird.f32 %v345_v23  ;;  %v355_v36 = vand.u32 2147483647, %v345_v23 }
 0x1a4   :  { %1027 = vrcp.f32 %v1174_v32 }
 0x1a5   :  { %v358_v38 = vor.u32 1.1754944e-38, %v357_v33  ;;  %vm356_vm5 = vcmp.eq.f32.partialorder %v355_v36, 8.507059e+37 }
 0x1a9   :  { %v1026_v25 = vpop.eup %1025 }
 0x1aa   :  { %v347_v27 = vmul.f32 %v1026_v25, %v345_v23  ;;  %vm352_vm2 = vweird.f32 %v1026_v25  ;;  %v1028_v50 = vpop.eup %1027 }
 0x1ab   :  { %vm353_vm4 = vmor %vm351_vm3, %vm352_vm2  ;;  %v466_v53 = vmul.f32 0.001999, %v1028_v50  ;;  %vm470_vm6 = vweird.f32 %v1028_v50 }
 0x1ac   :  { %v348_v28 = vsub.f32 1.0, %v347_v27 }
 0x1ad   :  { %v467_v0 = vsub.f32 1.0, %v466_v53 }
 0x1ae   :  { %v349_v29 = vmul.f32 %v1026_v25, %v348_v28 }
 0x1af   :  { %v468_v59 = vmul.f32 %v1028_v50, %v467_v0 }
 0x1b0   :  { %v350_v30 = vadd.f32 %v1026_v25, %v349_v29 }
 0x1b1   :  { %v469_v3 = vadd.f32 %v1028_v50, %v468_v59 }
 0x1b2   :  { %v354_v37 = vsel %vm353_vm4, %v1026_v25, %v350_v30 }
 0x1b3   :  { %v359_v39 = vsel %vm356_vm5, %v358_v38, %v354_v37  ;;  %v1400_v15 = vsel %vm470_vm6, %v1028_v50, %v469_v3 }
 0x1b4   :  { %v360_v42 = vmul.f32 %v359_v39, %v331_v41 }
 0x1b6   :  { %v1390_v45 = vsub.f32 %v53_v14, %v360_v42 }
 0x1b8   :  { %v363_v46 = vperm.slane %v1390_v45, 0 }
 0x1ff   :  { %v382_v48 = vpop.f32.mrf.mxu0 }
 0x200   :  { %v383_v47 = vadd.f32 %v382_v48, %v363_v46 }
 0x202   :  { %v385_v49 = vmul.f32 0.0078125, %v383_v47 }
 0x204   :  { %v415_v31 = vsel %vm57_vm0, %v385_v49, 0.0  ;;  %401 = vmatpush.msra.mxu3 %v385_v49 }
 0x205   :  { %v416_v56 = vrot.slane %v415_v31, 4  ;;  %977 = vmatmul.msk.f32.vlgmr.msra.gmra.mxu3 %vm114_vm1, %v1234_v9 }
 0x207   :  { %v417_v24 = vadd.f32 %v416_v56, %v415_v31 }
 0x209   :  { %v418_v2 = vrot.slane %v417_v24, 2 }
 0x20b   :  { %v419_v58 = vadd.f32 %v418_v2, %v417_v24 }
 0x20d   :  { %v420_v60 = vrot.slane %v419_v58, 1  ;;  %978 = vmatmul.msk.f32.gmra.mxu3 %vm114_vm1, %v1238_v10 }
 0x20f   :  { %v421_v61 = vadd.f32 %v420_v60, %v419_v58  ;;  %v422_v58 = vmul.f32 0.9, %v1308_v51 }
 0x211   :  { %v593_v63 = vmul.f32 0.1, %v421_v61  ;;  %v596_v4 = vmul.f32 %v421_v61, %v421_v61  ;;  %v434_v61 = vmul.f32 0.999, %v1254_v21 }
 0x213   :  { %v597_v6 = vmul.f32 0.001, %v596_v4  ;;  %v1398_v13 = vadd.f32 %v593_v63, %v592_v62 }
 0x215   :  { %v1402_v16 = vadd.f32 %v597_v6, %v595_v5  ;;  %979 = vmatmul.msk.f32.gmra.mxu3 %vm114_vm1, %v1242_v11 }
 0x217   :  { %v601_v17 = vmul.f32 %v1402_v16, %v1400_v15 }
 0x219   :  { %1029 = vrsqrt.f32 %v601_v17  ;;  %vm609_vm7 = vcmp.eq.f32.partialorder %v601_v17, inf  ;;  %v612_v30 = vand.u32 2147483648, %v601_v17  ;;  %vm611_vm8 = vcmp.eq.f32.partialorder %v601_v17, 0.0 }
 0x21a   :  { %1031 = vrcp.f32 %v1175_v19 }
 0x21d   :  { %980 = vmatmul.msk.f32.gmra.mxu3 %vm114_vm1, %v1246_v12 }
 0x21f   :  { %v1030_v8 = vpop.eup %1029 }
 0x220   :  { %v603_v40 = vmul.f32 %v1030_v8, %v601_v17  ;;  %v1032_v25 = vpop.eup %1031 }
 0x221   :  { %v451_v28 = vmul.f32 0.19, %v1032_v25  ;;  %vm455_vm9 = vweird.f32 %v1032_v25 }
 0x222   :  { %v604_v20 = vmul.f32 %v1030_v8, %v603_v40 }
 0x223   :  { %v452_v33 = vsub.f32 1.0, %v451_v28 }
 0x224   :  { %v605_v23 = vmul.f32 0.5, %v604_v20 }
 0x225   :  { %v453_v38 = vmul.f32 %v1032_v25, %v452_v33 }
 0x226   :  { %v606_v27 = vsub.f32 1.5, %v605_v23 }
 0x227   :  { %v454_v39 = vadd.f32 %v1032_v25, %v453_v38 }
 0x228   :  { %v607_v29 = vmul.f32 %v1030_v8, %v606_v27  ;;  %v436_v27 = vmul.f32 0.999, %v1272_v34  ;;  %v437_v34 = vmul.f32 0.999, %v1280_v44 }
 0x229   :  { %v1410_v14 = vsel %vm455_vm9, %v1032_v25, %v454_v39 }
 0x22a   :  { %v608_v22 = vmul.f32 %v607_v29, %v601_v17  ;;  %v599_v48 = vmul.f32 %v1398_v13, %v1410_v14 }
 0x22c   :  { %v610_v36 = vsel %vm609_vm7, %v601_v17, %v608_v22  ;;  %v600_v53 = vmul.f32 0.01, %v599_v48  ;;  %v435_v17 = vmul.f32 0.999, %v1264_v26 }
 0x22d   :  { %v613_v7 = vsel %vm611_vm8, %v612_v30, %v610_v36 }
 0x22e   :  { %v614_v37 = vadd.f32 1e-08, %v613_v7 }
 0x230   :  { %1033 = vrcp.f32 %v614_v37  ;;  %v626_v46 = vand.u32 2147483648, %v614_v37  ;;  %v624_v50 = vand.u32 2147483647, %v614_v37  ;;  %vm620_vm11 = vweird.f32 %v614_v37 }
 0x232   :  { %v627_v31 = vor.u32 1.1754944e-38, %v626_v46  ;;  %vm625_vm13 = vcmp.eq.f32.partialorder %v624_v50, 8.507059e+37 }
 0x236   :  { %v1034_v41 = vpop.eup %1033 }
 0x237   :  { %v616_v42 = vmul.f32 %v1034_v41, %v614_v37  ;;  %vm621_vm10 = vweird.f32 %v1034_v41 }
 0x238   :  { %vm622_vm12 = vmor %vm620_vm11, %vm621_vm10 }
 0x239   :  { %v617_v32 = vsub.f32 1.0, %v616_v42 }
 0x23b   :  { %v618_v47 = vmul.f32 %v1034_v41, %v617_v32 }
 0x23d   :  { %v619_v49 = vadd.f32 %v1034_v41, %v618_v47 }
 0x23f   :  { %v623_v56 = vsel %vm622_vm12, %v1034_v41, %v619_v49 }
 0x240   :  { %v628_v24 = vsel %vm625_vm13, %v627_v31, %v623_v56 }
 0x241   :  { %v1414_v0 = vmul.f32 %v628_v24, %v600_v53 }
 0x288   :  { %v403_v2 = vpop.f32.mrf.mxu3 }
 0x289   :  { %v426_v59 = vmul.f32 0.1, %v403_v2  ;;  %v438_v60 = vmul.f32 %v403_v2, %v403_v2 }
 0x28b   :  { %v1418_v3 = vadd.f32 %v426_v59, %v422_v58  ;;  %v442_v62 = vmul.f32 0.001, %v438_v60 }
 0x28d   :  { %v1420_v63 = vadd.f32 %v442_v62, %v434_v61 }
 0x28f   :  { %v472_v4 = vmul.f32 %v1400_v15, %v1420_v63 }
 0x290   :  { %v406_v5 = vpop.f32.mrf.mxu3 }
 0x291   :  { %1035 = vrsqrt.f32 %v472_v4  ;;  %v439_v6 = vmul.f32 %v406_v5, %v406_v5  ;;  %vm483_vm14 = vcmp.eq.f32.partialorder %v472_v4, inf  ;;  %v486_v32 = vand.u32 2147483648, %v472_v4 }
 0x292   :  { %vm485_vm15 = vcmp.eq.f32.partialorder %v472_v4, 0.0 }
 0x293   :  { %v443_v8 = vmul.f32 0.001, %v439_v6 }
 0x295   :  { %v1425_v19 = vadd.f32 %v443_v8, %v435_v17 }
 0x297   :  { %v1036_v51 = vpop.eup %1035  ;;  %v473_v21 = vmul.f32 %v1400_v15, %v1425_v19 }
 0x298   :  { %v477_v40 = vmul.f32 %v1036_v51, %v472_v4  ;;  %v1429_v20 = vpop.f32.mrf.mxu3 }
 0x299   :  { %1037 = vrsqrt.f32 %v473_v21  ;;  %v440_v23 = vmul.f32 %v1429_v20, %v1429_v20  ;;  %vm495_vm2 = vcmp.eq.f32.partialorder %v473_v21, inf  ;;  %v498_v59 = vand.u32 2147483648, %v473_v21 }
 0x29a   :  { %v478_v25 = vmul.f32 %v1036_v51, %v477_v40  ;;  %vm497_vm3 = vcmp.eq.f32.partialorder %v473_v21, 0.0 }
 0x29b   :  { %v444_v28 = vmul.f32 0.001, %v440_v23  ;;  %v457_v23 = vmul.f32 %v1410_v14, %v1418_v3 }
 0x29c   :  { %v479_v29 = vmul.f32 0.5, %v478_v25 }
 0x29d   :  { %v1434_v26 = vadd.f32 %v444_v28, %v436_v27  ;;  %v427_v27 = vmul.f32 0.1, %v406_v5  ;;  %v461_v5 = vmul.f32 0.01, %v457_v23 }
 0x29e   :  { %v480_v22 = vsub.f32 1.5, %v479_v29 }
 0x29f   :  { %v1038_v30 = vpop.eup %1037  ;;  %v474_v33 = vmul.f32 %v1400_v15, %v1434_v26 }
 0x2a0   :  { %v489_v36 = vmul.f32 %v1038_v30, %v473_v21  ;;  %v1438_v7 = vpop.f32.mrf.mxu3  ;;  %v481_v37 = vmul.f32 %v1036_v51, %v480_v22 }
 0x2a1   :  { %1039 = vrsqrt.f32 %v474_v33  ;;  %v441_v38 = vmul.f32 %v1438_v7, %v1438_v7  ;;  %vm507_vm4 = vcmp.eq.f32.partialorder %v474_v33, inf  ;;  %vm509_vm6 = vcmp.eq.f32.partialorder %v474_v33, 0.0 }
 0x2a2   :  { %v490_v39 = vmul.f32 %v1038_v30, %v489_v36  ;;  %v482_v41 = vmul.f32 %v481_v37, %v472_v4 }
 0x2a3   :  { %v445_v42 = vmul.f32 0.001, %v441_v38 }
 0x2a4   :  { %v491_v46 = vmul.f32 0.5, %v490_v39  ;;  %v484_v48 = vsel %vm483_vm14, %v472_v4, %v482_v41 }
 0x2a5   :  { %v1443_v47 = vadd.f32 %v445_v42, %v437_v34  ;;  %v487_v50 = vsel %vm485_vm15, %v486_v32, %v484_v48  ;;  %v423_v42 = vmul.f32 0.9, %v1311_v52 }
 0x2a6   :  { %v492_v49 = vsub.f32 1.5, %v491_v46  ;;  %v524_v31 = vadd.f32 1e-08, %v487_v50 }
 0x2a7   :  { %v1040_v53 = vpop.eup %1039  ;;  %v1447_v56 = vmul.f32 %v1400_v15, %v1443_v47 }
 0x2a8   :  { %v501_v24 = vmul.f32 %v1040_v53, %v474_v33  ;;  %v493_v2 = vmul.f32 %v1038_v30, %v492_v49  ;;  %1041 = vrcp.f32 %v524_v31  ;;  %v539_v30 = vand.u32 2147483648, %v524_v31 }
 0x2a9   :  { %1043 = vrsqrt.f32 %v1447_v56  ;;  %v537_v38 = vand.u32 2147483647, %v524_v31  ;;  %vm533_vm7 = vweird.f32 %v524_v31  ;;  %vm519_vm10 = vcmp.eq.f32.partialorder %v1447_v56, inf }
 0x2aa   :  { %v502_v44 = vmul.f32 %v1040_v53, %v501_v24  ;;  %v494_v58 = vmul.f32 %v493_v2, %v473_v21  ;;  %v540_v49 = vor.u32 1.1754944e-38, %v539_v30  ;;  %vm521_vm12 = vcmp.eq.f32.partialorder %v1447_v56, 0.0 }
 0x2ab   :  { %vm538_vm9 = vcmp.eq.f32.partialorder %v537_v38, 8.507059e+37 }
 0x2ac   :  { %v503_v60 = vmul.f32 0.5, %v502_v44  ;;  %v496_v61 = vsel %vm495_vm2, %v473_v21, %v494_v58  ;;  %v510_v21 = vand.u32 2147483648, %v474_v33  ;;  %v428_v44 = vmul.f32 0.1, %v1429_v20 }
 0x2ad   :  { %v499_v62 = vsel %vm497_vm3, %v498_v59, %v496_v61  ;;  %v522_v59 = vand.u32 2147483648, %v1447_v56 }
 0x2ae   :  { %v1042_v4 = vpop.eup %1041  ;;  %v504_v6 = vsub.f32 1.5, %v503_v60  ;;  %v1450_v17 = vadd.f32 1e-08, %v499_v62 }
 0x2af   :  { %v1044_v8 = vpop.eup %1043  ;;  %v529_v15 = vmul.f32 %v1042_v4, %v524_v31  ;;  %vm534_vm5 = vweird.f32 %v1042_v4 }
 0x2b0   :  { %v513_v51 = vmul.f32 %v1044_v8, %v1447_v56  ;;  %v505_v40 = vmul.f32 %v1040_v53, %v504_v6  ;;  %1045 = vrcp.f32 %v1450_v17  ;;  %vm535_vm8 = vmor %vm533_vm7, %vm534_vm5  ;;  %v1458_v53 = vadd.f32 %v427_v27, %v423_v42 }
 0x2b1   :  { %v530_v25 = vsub.f32 1.0, %v529_v15  ;;  %v554_v61 = vand.u32 2147483648, %v1450_v17  ;;  %v552_v20 = vand.u32 2147483647, %v1450_v17  ;;  %vm548_vm13 = vweird.f32 %v1450_v17 }
 0x2b2   :  { %v514_v28 = vmul.f32 %v1044_v8, %v513_v51  ;;  %v506_v29 = vmul.f32 %v505_v40, %v474_v33  ;;  %v458_v62 = vmul.f32 %v1410_v14, %v1458_v53 }
 0x2b3   :  { %v531_v22 = vmul.f32 %v1042_v4, %v530_v25  ;;  %v555_v25 = vor.u32 1.1754944e-38, %v554_v61  ;;  %vm553_vm15 = vcmp.eq.f32.partialorder %v552_v20, 8.507059e+37 }
 0x2b4   :  { %v515_v36 = vmul.f32 0.5, %v514_v28  ;;  %v508_v37 = vsel %vm507_vm4, %v474_v33, %v506_v29  ;;  %v424_v33 = vmul.f32 0.9, %v1300_v43  ;;  %v462_v27 = vmul.f32 0.01, %v458_v62 }
 0x2b5   :  { %v511_v39 = vsel %vm509_vm6, %v510_v21, %v508_v37  ;;  %v532_v41 = vadd.f32 %v1042_v4, %v531_v22  ;;  %v425_v37 = vmul.f32 0.9, %v1316_v54 }
 0x2b6   :  { %v1046_v34 = vpop.eup %1045  ;;  %v516_v32 = vsub.f32 1.5, %v515_v36  ;;  %v526_v46 = vadd.f32 1e-08, %v511_v39  ;;  %v1474_v15 = vadd.f32 %v428_v44, %v424_v33 }
 0x2b7   :  { %v544_v48 = vmul.f32 %v1046_v34, %v1450_v17  ;;  %v536_v50 = vsel %vm535_vm8, %v1042_v4, %v532_v41  ;;  %vm549_vm11 = vweird.f32 %v1046_v34  ;;  %v429_v17 = vmul.f32 0.1, %v1438_v7 }
 0x2b8   :  { %v517_v24 = vmul.f32 %v1044_v8, %v516_v32  ;;  %1047 = vrcp.f32 %v526_v46  ;;  %v541_v31 = vsel %vm538_vm9, %v540_v49, %v536_v50  ;;  %vm550_vm14 = vmor %vm548_vm13, %vm549_vm11  ;;  %v569_v21 = vand.u32 2147483648, %v526_v46 }
 0x2b9   :  { %v545_v2 = vsub.f32 1.0, %v544_v48  ;;  %v1464_v58 = vmul.f32 %v541_v31, %v461_v5  ;;  %v567_v36 = vand.u32 2147483647, %v526_v46  ;;  %vm563_vm3 = vweird.f32 %v526_v46 }
 0x2ba   :  { %v518_v52 = vmul.f32 %v517_v24, %v1447_v56  ;;  %v1480_v42 = vadd.f32 %v429_v17, %v425_v37  ;;  %v876_v17 = vmul.f32 0.999, %v1402_v16 }
 0x2bb   :  { %v546_v60 = vmul.f32 %v1046_v34, %v545_v2  ;;  %vm568_vm5 = vcmp.eq.f32.partialorder %v567_v36, 8.507059e+37  ;;  %v1498_v62 = vsub.f32 %v1378_v18, %v1464_v58 }
 0x2bc   :  { %v520_v43 = vsel %vm519_vm10, %v1447_v56, %v518_v52  ;;  %v459_v56 = vmul.f32 %v1410_v14, %v1474_v15  ;;  %v460_v24 = vmul.f32 %v1410_v14, %v1480_v42 }
 0x2bd   :  { %v523_v4 = vsel %vm521_vm12, %v522_v59, %v520_v43  ;;  %v547_v6 = vadd.f32 %v1046_v34, %v546_v60 }
 0x2be   :  { %v1048_v8 = vpop.eup %1047  ;;  %v527_v51 = vadd.f32 1e-08, %v523_v4  ;;  %v463_v41 = vmul.f32 0.01, %v459_v56  ;;  %v464_v31 = vmul.f32 0.01, %v460_v24 }
 0x2bf   :  { %v559_v40 = vmul.f32 %v1048_v8, %v526_v46  ;;  %v551_v23 = vsel %vm550_vm14, %v1046_v34, %v547_v6  ;;  %vm564_vm2 = vweird.f32 %v1048_v8  ;;  %v570_v34 = vor.u32 1.1754944e-38, %v569_v21 }
 0x2c0   :  { %1049 = vrcp.f32 %v527_v51  ;;  %v556_v29 = vsel %vm553_vm15, %v555_v25, %v551_v23  ;;  %vm565_vm4 = vmor %vm563_vm3, %vm564_vm2  ;;  %v584_v7 = vand.u32 2147483648, %v527_v51  ;;  %v582_v54 = vand.u32 2147483647, %v527_v51 }
 0x2c1   :  { %v560_v28 = vsub.f32 1.0, %v559_v40  ;;  %v557_v22 = vmul.f32 %v556_v29, %v462_v27  ;;  %vm578_vm7 = vweird.f32 %v527_v51 }
 0x2c2   :  { %v585_v2 = vor.u32 1.1754944e-38, %v584_v7  ;;  %vm583_vm9 = vcmp.eq.f32.partialorder %v582_v54, 8.507059e+37 }
 0x2c3   :  { %v561_v30 = vmul.f32 %v1048_v8, %v560_v28  ;;  %v1493_v14 = vsub.f32 %v1374_v35, %v557_v22  ;;  %v873_v22 = vmul.f32 0.9, %v1398_v13 }
 0x2c5   :  { %v562_v38 = vadd.f32 %v1048_v8, %v561_v30 }
 0x2c6   :  { %v1050_v39 = vpop.eup %1049 }
 0x2c7   :  { %v574_v32 = vmul.f32 %v1050_v39, %v527_v51  ;;  %v566_v5 = vsel %vm565_vm4, %v1048_v8, %v562_v38  ;;  %vm579_vm6 = vweird.f32 %v1050_v39 }
 0x2c8   :  { %v571_v48 = vsel %vm568_vm5, %v570_v34, %v566_v5  ;;  %vm580_vm8 = vmor %vm578_vm7, %vm579_vm6 }
 0x2c9   :  { %v575_v50 = vsub.f32 1.0, %v574_v32  ;;  %v572_v49 = vmul.f32 %v571_v48, %v463_v41 }
 0x2cb   :  { %v576_v33 = vmul.f32 %v1050_v39, %v575_v50  ;;  %v1489_v61 = vsub.f32 %v1370_v57, %v572_v49  ;;  %v1176_v57 = vmov 0.002997001  }
 0x2cc   :  { %1051 = vrcp.f32 %v1176_v57 }
 0x2cd   :  { %v577_v46 = vadd.f32 %v1050_v39, %v576_v33 }
 0x2cf   :  { %v581_v44 = vsel %vm580_vm8, %v1050_v39, %v577_v46  ;;  %v1177_v39 = vmov 0.271  }
 0x2d0   :  { %v586_v52 = vsel %vm583_vm9, %v585_v2, %v581_v44 }
 0x2d1   :  { %v587_v59 = vmul.f32 %v586_v52, %v464_v31 }
 0x2d2   :  { %v1052_v4 = vpop.eup %1051 }
 0x2d3   :  { %v1485_v60 = vsub.f32 %v1366_v55, %v587_v59  ;;  %v1505_v55 = vsub.f32 %v1390_v45, %v1414_v0  ;;  %v747_v51 = vmul.f32 0.002997001, %v1052_v4  ;;  %vm751_vm10 = vweird.f32 %v1052_v4 }
 0x2d5   :  { %646 = vmatpush.msra.mxu0 %v1485_v60  ;;  %v632_v35 = vperm.slane %v1505_v55, 0  ;;  %v748_v0 = vsub.f32 1.0, %v747_v51 }
 0x2d7   :  { %647 = vmatpush.msra.mxu0 %v1489_v61  ;;  %v749_v25 = vmul.f32 %v1052_v4, %v748_v0 }
 0x2d9   :  { %648 = vmatpush.msra.mxu0 %v1493_v14  ;;  %v750_v29 = vadd.f32 %v1052_v4, %v749_v25 }
 0x2db   :  { %649 = vmatpush.msra.mxu0 %v1498_v62  ;;  %v1516_v36 = vsel %vm751_vm10, %v1052_v4, %v750_v29 }
 0x2dc   :  { %981 = vmatmul.msk.f32.vlgmr.msra.gmra.mxu0 %vm57_vm0, %v1213_v1 }
 0x359   :  { %v651_v43 = vpop.f32.mrf.mxu0 }
 0x35a   :  { %v652_v20 = vadd.f32 %v651_v43, %v632_v35 }
 0x35c   :  { %v666_v6 = vmul.f32 0.0078125, %v652_v20  ;;  %v654_v8 = vmul.f32 %v652_v20, %v652_v20 }
 0x35e   :  { %682 = vmatpush.msra.mxu2 %v666_v6  ;;  %v696_v18 = vsel %vm57_vm0, %v666_v6, 0.0  ;;  %v655_v58 = vsel %vm57_vm0, %v654_v8, 0.0 }
 0x35f   :  { %v697_v1 = vrot.slane %v696_v18, 4  ;;  %982 = vmatmul.msk.f32.vlgmr.msra.gmra.mxu2 %vm114_vm1, %v1234_v9  ;;  %656 = vadd.xlane.f32.xlu0 %v655_v58 }
 0x361   :  { %v698_v45 = vadd.f32 %v697_v1, %v696_v18 }
 0x363   :  { %v699_v40 = vrot.slane %v698_v45, 2 }
 0x365   :  { %v700_v23 = vadd.f32 %v699_v40, %v698_v45 }
 0x367   :  { %v701_v27 = vrot.slane %v700_v23, 1  ;;  %983 = vmatmul.msk.f32.gmra.mxu2 %vm114_vm1, %v1238_v10 }
 0x369   :  { %v702_v28 = vadd.f32 %v701_v27, %v700_v23  ;;  %v703_v27 = vmul.f32 0.9, %v1418_v3 }
 0x36b   :  { %v874_v56 = vmul.f32 0.1, %v702_v28  ;;  %v877_v21 = vmul.f32 %v702_v28, %v702_v28 }
 0x36d   :  { %v878_v9 = vmul.f32 0.001, %v877_v21  ;;  %v875_v30 = vadd.f32 %v874_v56, %v873_v22  ;;  %v715_v21 = vmul.f32 0.999, %v1420_v63 }
 0x36f   :  { %v879_v37 = vadd.f32 %v878_v9, %v876_v17  ;;  %984 = vmatmul.msk.f32.gmra.mxu2 %vm114_vm1, %v1242_v11 }
 0x371   :  { %v882_v38 = vmul.f32 %v879_v37, %v1516_v36 }
 0x373   :  { %1053 = vrsqrt.f32 %v882_v38  ;;  %vm890_vm11 = vcmp.eq.f32.partialorder %v882_v38, inf  ;;  %v893_v49 = vand.u32 2147483648, %v882_v38  ;;  %vm892_vm12 = vcmp.eq.f32.partialorder %v882_v38, 0.0 }
 0x374   :  { %1055 = vrcp.f32 %v1177_v39 }
 0x377   :  { %985 = vmatmul.msk.f32.gmra.mxu2 %vm114_vm1, %v1246_v12 }
 0x379   :  { %v1054_v10 = vpop.eup %1053 }
 0x37a   :  { %v884_v13 = vmul.f32 %v1054_v10, %v882_v38  ;;  %v1056_v34 = vpop.eup %1055 }
 0x37b   :  { %v732_v5 = vmul.f32 0.271, %v1056_v34  ;;  %vm736_vm1 = vweird.f32 %v1056_v34 }
 0x37c   :  { %v885_v41 = vmul.f32 %v1054_v10, %v884_v13 }
 0x37d   :  { %v733_v11 = vsub.f32 1.0, %v732_v5 }
 0x37e   :  { %v886_v16 = vmul.f32 0.5, %v885_v41 }
 0x37f   :  { %v734_v54 = vmul.f32 %v1056_v34, %v733_v11 }
 0x380   :  { %v887_v32 = vsub.f32 1.5, %v886_v16 }
 0x381   :  { %v735_v12 = vadd.f32 %v1056_v34, %v734_v54 }
 0x382   :  { %v888_v48 = vmul.f32 %v1054_v10, %v887_v32  ;;  %v717_v32 = vmul.f32 0.999, %v1434_v26 }
 0x383   :  { %v1523_v31 = vsel %vm736_vm1, %v1056_v34, %v735_v12 }
 0x384   :  { %v889_v50 = vmul.f32 %v888_v48, %v882_v38  ;;  %v880_v59 = vmul.f32 %v875_v30, %v1523_v31 }
 0x386   :  { %v891_v7 = vsel %vm890_vm11, %v882_v38, %v889_v50  ;;  %v881_v4 = vmul.f32 0.01, %v880_v59  ;;  %v716_v38 = vmul.f32 0.999, %v1425_v19 }
 0x387   :  { %v894_v24 = vsel %vm892_vm12, %v893_v49, %v891_v7 }
 0x388   :  { %v895_v33 = vadd.f32 1e-08, %v894_v24 }
 0x38a   :  { %1057 = vrcp.f32 %v895_v33  ;;  %v907_v52 = vand.u32 2147483648, %v895_v33  ;;  %v905_v35 = vand.u32 2147483647, %v895_v33  ;;  %vm901_vm14 = vweird.f32 %v895_v33 }
 0x38c   :  { %v908_v20 = vor.u32 1.1754944e-38, %v907_v52  ;;  %vm906_vm2 = vcmp.eq.f32.partialorder %v905_v35, 8.507059e+37 }
 0x390   :  { %v1058_v46 = vpop.eup %1057 }
 0x391   :  { %v897_v2 = vmul.f32 %v1058_v46, %v895_v33  ;;  %vm902_vm13 = vweird.f32 %v1058_v46 }
 0x392   :  { %vm903_vm15 = vmor %vm901_vm14, %vm902_vm13 }
 0x393   :  { %v898_v44 = vsub.f32 1.0, %v897_v2  ;;  %v718_v2 = vmul.f32 0.999, %v1443_v47 }
 0x395   :  { %v899_v57 = vmul.f32 %v1058_v46, %v898_v44 }
 0x397   :  { %v900_v43 = vadd.f32 %v1058_v46, %v899_v57 }
 0x399   :  { %v904_v6 = vsel %vm903_vm15, %v1058_v46, %v900_v43 }
 0x39a   :  { %v909_v8 = vsel %vm906_vm2, %v908_v20, %v904_v6 }
 0x39b   :  { %v1526_v18 = vmul.f32 %v909_v8, %v881_v4 }
 0x3d2   :  { %v657_v58 = vpop.xlane.xlu0 %656 }
 0x3d3   :  { %v658_v51 = vrot.slane %v657_v58, 4 }
 0x3d5   :  { %v659_v1 = vadd.f32 %v658_v51, %v657_v58 }
 0x3d7   :  { %v660_v45 = vrot.slane %v659_v1, 2 }
 0x3d9   :  { %v661_v0 = vadd.f32 %v660_v45, %v659_v1 }
 0x3db   :  { %v662_v40 = vrot.slane %v661_v0, 1 }
 0x3dd   :  { %v663_v23 = vadd.f32 %v662_v40, %v661_v0 }
 0x3df   :  { %987 = vpush %v663_v23 }
 0x3e2   :  { %v684_v25 = vpop.f32.mrf.mxu2 }
 0x3e3   :  { %v707_v28 = vmul.f32 0.1, %v684_v25  ;;  %v719_v29 = vmul.f32 %v684_v25, %v684_v25 }
 0x3e5   :  { %v1529_v56 = vadd.f32 %v707_v28, %v703_v27  ;;  %v723_v22 = vmul.f32 0.001, %v719_v29 }
 0x3e7   :  { %v727_v17 = vadd.f32 %v723_v22, %v715_v21  ;;  %v738_v22 = vmul.f32 %v1523_v31, %v1529_v56 }
 0x3e9   :  { %v753_v9 = vmul.f32 %v1516_v36, %v727_v17 }
 0x3ea   :  { %v687_v30 = vpop.f32.mrf.mxu2 }
 0x3eb   :  { %1059 = vrsqrt.f32 %v753_v9  ;;  %v720_v37 = vmul.f32 %v687_v30, %v687_v30  ;;  %vm764_vm3 = vcmp.eq.f32.partialorder %v753_v9, inf  ;;  %v767_v44 = vand.u32 2147483648, %v753_v9 }
 0x3ec   :  { %vm766_vm4 = vcmp.eq.f32.partialorder %v753_v9, 0.0 }
 0x3ed   :  { %v724_v10 = vmul.f32 0.001, %v720_v37 }
 0x3ef   :  { %v728_v39 = vadd.f32 %v724_v10, %v716_v38 }
 0x3f1   :  { %v1060_v13 = vpop.eup %1059  ;;  %v754_v3 = vmul.f32 %v1516_v36, %v728_v39 }
 0x3f2   :  { %v758_v41 = vmul.f32 %v1060_v13, %v753_v9  ;;  %v1535_v16 = vpop.f32.mrf.mxu2 }
 0x3f3   :  { %1061 = vrsqrt.f32 %v754_v3  ;;  %v721_v63 = vmul.f32 %v1535_v16, %v1535_v16  ;;  %vm776_vm5 = vcmp.eq.f32.partialorder %v754_v3, inf  ;;  %v779_v1 = vand.u32 2147483648, %v754_v3 }
 0x3f4   :  { %v759_v34 = vmul.f32 %v1060_v13, %v758_v41  ;;  %vm778_vm6 = vcmp.eq.f32.partialorder %v754_v3, 0.0 }
 0x3f5   :  { %v725_v5 = vmul.f32 0.001, %v721_v63 }
 0x3f6   :  { %v760_v48 = vmul.f32 0.5, %v759_v34 }
 0x3f7   :  { %v729_v50 = vadd.f32 %v725_v5, %v717_v32 }
 0x3f8   :  { %v761_v49 = vsub.f32 1.5, %v760_v48  ;;  %v704_v48 = vmul.f32 0.9, %v1458_v53  ;;  %v709_v53 = vmul.f32 0.1, %v1535_v16 }
 0x3f9   :  { %v1062_v19 = vpop.eup %1061  ;;  %v755_v11 = vmul.f32 %v1516_v36, %v729_v50  ;;  %v742_v50 = vmul.f32 0.01, %v738_v22 }
 0x3fa   :  { %v770_v7 = vmul.f32 %v1062_v19, %v754_v3  ;;  %v1541_v24 = vpop.f32.mrf.mxu2  ;;  %v762_v33 = vmul.f32 %v1060_v13, %v761_v49 }
 0x3fb   :  { %1063 = vrsqrt.f32 %v755_v11  ;;  %v722_v54 = vmul.f32 %v1541_v24, %v1541_v24  ;;  %vm788_vm7 = vcmp.eq.f32.partialorder %v755_v11, inf  ;;  %v791_v10 = vand.u32 2147483648, %v755_v11 }
 0x3fc   :  { %v771_v12 = vmul.f32 %v1062_v19, %v770_v7  ;;  %v763_v46 = vmul.f32 %v762_v33, %v753_v9  ;;  %vm790_vm9 = vcmp.eq.f32.partialorder %v755_v11, 0.0 }
 0x3fd   :  { %v726_v26 = vmul.f32 0.001, %v722_v54 }
 0x3fe   :  { %v772_v52 = vmul.f32 0.5, %v771_v12  ;;  %v765_v59 = vsel %vm764_vm3, %v753_v9, %v763_v46  ;;  %v708_v9 = vmul.f32 0.1, %v687_v30 }
 0x3ff   :  { %v730_v57 = vadd.f32 %v726_v26, %v718_v2  ;;  %v768_v35 = vsel %vm766_vm4, %v767_v44, %v765_v59 }
 0x400   :  { %v773_v43 = vsub.f32 1.5, %v772_v52  ;;  %v805_v20 = vadd.f32 1e-08, %v768_v35  ;;  %v712_v33 = vadd.f32 %v708_v9, %v704_v48 }
 0x401   :  { %v1064_v4 = vpop.eup %1063  ;;  %v1547_v6 = vmul.f32 %v1516_v36, %v730_v57 }
 0x402   :  { %v782_v8 = vmul.f32 %v1064_v4, %v755_v11  ;;  %v774_v58 = vmul.f32 %v1062_v19, %v773_v43  ;;  %1065 = vrcp.f32 %v805_v20  ;;  %v820_v13 = vand.u32 2147483648, %v805_v20 }
 0x403   :  { %1067 = vrsqrt.f32 %v1547_v6  ;;  %v818_v63 = vand.u32 2147483647, %v805_v20  ;;  %vm814_vm10 = vweird.f32 %v805_v20  ;;  %vm800_vm1 = vcmp.eq.f32.partialorder %v1547_v6, inf }
 0x404   :  { %v783_v47 = vmul.f32 %v1064_v4, %v782_v8  ;;  %v775_v51 = vmul.f32 %v774_v58, %v754_v3  ;;  %v821_v7 = vor.u32 1.1754944e-38, %v820_v13  ;;  %v803_v44 = vand.u32 2147483648, %v1547_v6 }
 0x405   :  { %vm819_vm12 = vcmp.eq.f32.partialorder %v818_v63, 8.507059e+37  ;;  %v739_v57 = vmul.f32 %v1523_v31, %v712_v33  ;;  %vm802_vm14 = vcmp.eq.f32.partialorder %v1547_v6, 0.0 }
 0x406   :  { %v784_v45 = vmul.f32 0.5, %v783_v47  ;;  %v777_v0 = vsel %vm776_vm5, %v754_v3, %v775_v51 }
 0x407   :  { %v780_v40 = vsel %vm778_vm6, %v779_v1, %v777_v0  ;;  %v743_v1 = vmul.f32 0.01, %v739_v57 }
 0x408   :  { %v1066_v23 = vpop.eup %1065  ;;  %v785_v25 = vsub.f32 1.5, %v784_v45  ;;  %v1550_v27 = vadd.f32 1e-08, %v780_v40 }
 0x409   :  { %v1068_v28 = vpop.eup %1067  ;;  %v810_v36 = vmul.f32 %v1066_v23, %v805_v20  ;;  %vm815_vm8 = vweird.f32 %v1066_v23 }
 0x40a   :  { %v794_v29 = vmul.f32 %v1068_v28, %v1547_v6  ;;  %v786_v21 = vmul.f32 %v1064_v4, %v785_v25  ;;  %1069 = vrcp.f32 %v1550_v27  ;;  %vm816_vm11 = vmor %vm814_vm10, %vm815_vm8  ;;  %v835_v59 = vand.u32 2147483648, %v1550_v27 }
 0x40b   :  { %v811_v17 = vsub.f32 1.0, %v810_v36  ;;  %v833_v16 = vand.u32 2147483647, %v1550_v27  ;;  %vm829_vm15 = vweird.f32 %v1550_v27  ;;  %v710_v25 = vmul.f32 0.1, %v1541_v24 }
 0x40c   :  { %v795_v37 = vmul.f32 %v1068_v28, %v794_v29  ;;  %v787_v38 = vmul.f32 %v786_v21, %v755_v11  ;;  %v836_v51 = vor.u32 1.1754944e-38, %v835_v59  ;;  %v706_v36 = vmul.f32 0.9, %v1480_v42 }
 0x40d   :  { %v812_v39 = vmul.f32 %v1066_v23, %v811_v17  ;;  %vm834_vm3 = vcmp.eq.f32.partialorder %v833_v16, 8.507059e+37 }
 0x40e   :  { %v796_v3 = vmul.f32 0.5, %v795_v37  ;;  %v789_v41 = vsel %vm788_vm7, %v755_v11, %v787_v38  ;;  %v705_v11 = vmul.f32 0.9, %v1474_v15  ;;  %v714_v9 = vadd.f32 %v710_v25, %v706_v36 }
 0x40f   :  { %v792_v34 = vsel %vm790_vm9, %v791_v10, %v789_v41  ;;  %v813_v32 = vadd.f32 %v1066_v23, %v812_v39 }
 0x410   :  { %v1070_v5 = vpop.eup %1069  ;;  %v797_v56 = vsub.f32 1.5, %v796_v3  ;;  %s988_s2 = spop %987  ;;  %v807_v30 = vadd.f32 1e-08, %v792_v34  ;;  %v713_v4 = vadd.f32 %v709_v53, %v705_v11  ;;  %v741_v24 = vmul.f32 %v1523_v31, %v714_v9 }
 0x411   :  { %s665_s29 = smul.f32 0.00390625, %s988_s2  ;;  %v825_v49 = vmul.f32 %v1070_v5, %v1550_v27  ;;  %v817_v19 = vsel %vm816_vm11, %v1066_v23, %v813_v32  ;;  %vm830_vm13 = vweird.f32 %v1070_v5 }
 0x412   :  { %v798_v54 = vmul.f32 %v1068_v28, %v797_v56  ;;  %1071 = vrcp.f32 %v807_v30  ;;  %v822_v46 = vsel %vm819_vm12, %v821_v7, %v817_v19  ;;  %vm831_vm2 = vmor %vm829_vm15, %vm830_vm13  ;;  %v850_v40 = vand.u32 2147483648, %v807_v30  ;;  %v1075_v19 = vld [vmem:[#allocation2] sm:$0xff] }
 0x413   :  { %937 = sst [smem:[#allocation9]] %s665_s29  ;;  %v826_v12 = vsub.f32 1.0, %v825_v49  ;;  %v1562_v26 = vmul.f32 %v822_v46, %v742_v50  ;;  %v848_v27 = vand.u32 2147483647, %v807_v30  ;;  %vm844_vm5 = vweird.f32 %v807_v30 }
 0x414   :  { %v799_v2 = vmul.f32 %v798_v54, %v1547_v6  ;;  %v851_v17 = vor.u32 1.1754944e-38, %v850_v40  ;;  %v745_v32 = vmul.f32 0.01, %v741_v24  ;;  %957 = dma.smem_to_hbm %s1178_s7, 16, %s955_s6, [#allocation5]  }
 0x415   :  { %v827_v52 = vmul.f32 %v1070_v5, %v826_v12  ;;  %vm849_vm7 = vcmp.eq.f32.partialorder %v848_v27, 8.507059e+37  ;;  %v869_v49 = vsub.f32 %v1498_v62, %v1562_v26 }
 0x416   :  { %v801_v15 = vsel %vm800_vm1, %v1547_v6, %v799_v2  ;;  %v740_v6 = vmul.f32 %v1523_v31, %v713_v4 }
 0x417   :  { %v804_v35 = vsel %vm802_vm14, %v803_v44, %v801_v15  ;;  %v828_v43 = vadd.f32 %v1070_v5, %v827_v52 }
 0x418   :  { %v1072_v20 = vpop.eup %1071  ;;  %v808_v8 = vadd.f32 1e-08, %v804_v35  ;;  %v744_v22 = vmul.f32 0.01, %v740_v6 }
 0x419   :  { %v840_v58 = vmul.f32 %v1072_v20, %v807_v30  ;;  %v832_v47 = vsel %vm831_vm2, %v1070_v5, %v828_v43  ;;  %vm845_vm4 = vweird.f32 %v1072_v20 }
 0x41a   :  { %1073 = vrcp.f32 %v808_v8  ;;  %v837_v0 = vsel %vm834_vm3, %v836_v51, %v832_v47  ;;  %vm846_vm6 = vmor %vm844_vm5, %vm845_vm4  ;;  %v865_v3 = vand.u32 2147483648, %v808_v8  ;;  %v863_v63 = vand.u32 2147483647, %v808_v8 }
 0x41b   :  { %v841_v45 = vsub.f32 1.0, %v840_v58  ;;  %v838_v23 = vmul.f32 %v837_v0, %v743_v1  ;;  %vm859_vm9 = vweird.f32 %v808_v8 }
 0x41c   :  { %v866_v34 = vor.u32 1.1754944e-38, %v865_v3  ;;  %vm864_vm11 = vcmp.eq.f32.partialorder %v863_v63, 8.507059e+37 }
 0x41d   :  { %v842_v28 = vmul.f32 %v1072_v20, %v841_v45  ;;  %v870_v31 = vsub.f32 %v1493_v14, %v838_v23 }
 0x41f   :  { %v843_v29 = vadd.f32 %v1072_v20, %v842_v28 }
 0x420   :  { %v1074_v21 = vpop.eup %1073 }
 0x421   :  { %v855_v37 = vmul.f32 %v1074_v21, %v808_v8  ;;  %v847_v38 = vsel %vm846_vm6, %v1072_v20, %v843_v29  ;;  %vm860_vm8 = vweird.f32 %v1074_v21 }
 0x422   :  { %v852_v10 = vsel %vm849_vm7, %v851_v17, %v847_v38  ;;  %vm861_vm10 = vmor %vm859_vm9, %vm860_vm8 }
 0x423   :  { %v856_v39 = vsub.f32 1.0, %v855_v37  ;;  %v853_v13 = vmul.f32 %v852_v10, %v744_v22 }
 0x425   :  { %v857_v41 = vmul.f32 %v1074_v21, %v856_v39  ;;  %v871_v50 = vsub.f32 %v1489_v61, %v853_v13 }
 0x427   :  { %v858_v42 = vadd.f32 %v1074_v21, %v857_v41 }
 0x429   :  { %v862_v5 = vsel %vm861_vm10, %v1074_v21, %v858_v42 }
 0x42a   :  { %v867_v48 = vsel %vm864_vm11, %v866_v34, %v862_v5 }
 0x42b   :  { %v868_v56 = vmul.f32 %v867_v48, %v745_v32 }
 0x42d   :  { %v872_v30 = vsub.f32 %v1485_v60, %v868_v56  ;;  %v911_v60 = vsub.f32 %v1505_v55, %v1526_v18 }
 0x42f   :  { %927 = vmatpush.msrb.mxu0 %v872_v30  ;;  %v913_v61 = vperm.slane %v911_v60, 0 }
 0x431   :  { %928 = vmatpush.msrb.mxu0 %v871_v50 }
 0x433   :  { %929 = vmatpush.msrb.mxu0 %v870_v31 }
 0x435   :  { %930 = vmatpush.msrb.mxu0 %v869_v49 }
 0x436   :  { %986 = vmatmul.msk.f32.vlgmr.msrb.gmra.mxu0 %vm57_vm0, %v1075_v19 }
 0x4b3   :  { %v932_v14 = vpop.f32.mrf.mxu0 }
 0x4b4   :  { %v933_v62 = vadd.f32 %v932_v14, %v913_v61 }
 0x4b6   :  { %935 = vst.msk [vmem:[#allocation8] sm:$0xff] %vm57_vm0, %v933_v62 }
 0x4b7   :  { %948 = dma.vmem_to_hbm [thread:$0]  %s944_s9, 128, %s946_s12, [#allocation4]  }
 0x4b8   :  { %1164 = dma.done.wait [#allocation4], 128  }
 0x4b9   :  { %1165 = vsyncadd [#allocation4], 4294967168 }
 0x4ba   :  { %1166 = dma.done.wait [#allocation5], 16  }
 0x4bb   :  { %1167 = vsyncadd [#allocation5], 4294967280 }
 0x4bc   :  { %966 = sfence }
 0x4bd   :  { %967 = vsyncpa [#allocation3], 1 }
 0x4be   :  { %968 = vsyncpa [#allocation7], 1 }
 0x4bf   :  { %969 = vsyncpa [#allocation4], 1 }
 0x4c0   :  { %970 = vsyncpa [#allocation5], 1 }

</bundles_post_ra>
